<compile_context>
chip_gen: v7x
topology: tpu7x:2x2x1
jax: 0.10.0
libtpu: 0.0.40
codegen_flags: <defaults>
</compile_context>

<pallas_src>
import functools

import jax
import jax.numpy as jnp
from jax.experimental import pallas as pl
from jax.experimental.pallas import tpu as pltpu


def _ce_label_smooth_kernel(logits_ref, targets_ref, out_ref, acc_ref, *,
                            epsilon, num_classes, batch_size, block_rows):
    i = pl.program_id(0)

    @pl.when(i == 0)
    def _init():
        acc_ref[...] = jnp.zeros_like(acc_ref)

    x = logits_ref[...].astype(jnp.float32)            # (TB, C)
    tgt = targets_ref[...]                             # (TB, 1) int32

    # Row-validity mask for the (possibly partial) last batch tile.
    row_ids = i * block_rows + jax.lax.broadcasted_iota(
        jnp.int32, (block_rows, 1), 0)                 # (TB, 1)
    row_valid = row_ids < batch_size                   # (TB, 1) bool

    # Zero padded rows so garbage VMEM contents (NaN/Inf) cannot poison reductions.
    x = jnp.where(row_valid, x, 0.0)

    # loss_b = logsumexp(x_b) - (1-eps) * x[b, t_b] - (eps/K) * sum_c x[b, c]
    m = jnp.max(x, axis=1, keepdims=True)                              # (TB, 1)
    sum_exp = jnp.sum(jnp.exp(x - m), axis=1, keepdims=True)           # (TB, 1)
    lse = m + jnp.log(sum_exp)                                         # (TB, 1)
    row_sum = jnp.sum(x, axis=1, keepdims=True)                        # (TB, 1)

    cls_ids = jax.lax.broadcasted_iota(jnp.int32, x.shape, 1)          # (TB, C)
    t_logit = jnp.sum(jnp.where(cls_ids == tgt, x, 0.0),
                      axis=1, keepdims=True)                           # (TB, 1)

    per_row = (lse
               - (1.0 - epsilon) * t_logit
               - (epsilon / num_classes) * row_sum)                    # (TB, 1)
    per_row = jnp.where(row_valid, per_row, 0.0)

    acc_ref[...] += jnp.sum(per_row, axis=(0, 1), keepdims=True)       # (1, 1)

    @pl.when(i == pl.num_programs(0) - 1)
    def _finalize():
        out_ref[...] = acc_ref[...] * (1.0 / batch_size)


def _choose_block_rows(batch, num_classes, itemsize):
    # Target ~8 MiB of logits per pipeline buffer (BlockSpec double-buffers),
    # multiple of 8 rows; small batches become a single full-extent tile.
    budget = 8 << 20
    rows = budget // max(1, num_classes * itemsize)
    rows = int(max(8, min(1024, rows)))
    rows -= rows % 8
    if batch <= rows:
        return batch
    return rows


def cross_entropy_label_smooth(logits, targets, *, num_classes, epsilon=0.1,
                               block_rows=None):
    """logits: (B, num_classes); targets: (B,) int labels. Returns scalar mean loss
    (matches CrossEntropyLabelSmooth with reduction=True)."""
    B, C = logits.shape
    assert C == num_classes
    targets_2d = targets.astype(jnp.int32).reshape(B, 1)

    itemsize = jnp.dtype(logits.dtype).itemsize
    if block_rows is None:
        block_rows = _choose_block_rows(B, C, itemsize)
    block_rows = int(block_rows)
    num_tiles = pl.cdiv(B, block_rows)

    kernel = functools.partial(
        _ce_label_smooth_kernel,
        epsilon=float(epsilon),
        num_classes=int(num_classes),
        batch_size=int(B),
        block_rows=block_rows,
    )

    # Scoped-VMEM sized for double-buffered logits + targets tiles (+ slack),
    # clamped to <= 32 MiB so it is safe on every generation incl. v7x (64 MiB phys).
    tile_bytes = block_rows * (C * itemsize + 4)
    vmem_limit = min(max(4 * tile_bytes + (1 << 20), 16 << 20), 32 << 20)

    cost = pl.CostEstimate(
        flops=5 * B * C,
        transcendentals=B * C,
        bytes_accessed=B * C * itemsize + B * 4 + 4,
    )

    # TODO(synk): for v7x megacore, emit per-tile partial sums to a lane-dense
    # output and mark the batch axis "parallel" to use both TensorCores.
    out = pl.pallas_call(
        kernel,
        out_shape=jax.ShapeDtypeStruct((1, 1), jnp.float32),
        grid=(num_tiles,),
        in_specs=[
            pl.BlockSpec((block_rows, C), lambda i: (i, 0)),
            pl.BlockSpec((block_rows, 1), lambda i: (i, 0)),
        ],
        out_specs=pl.BlockSpec((1, 1), lambda i: (0, 0)),
        scratch_shapes=[pltpu.VMEM((1, 1), jnp.float32)],
        compiler_params=pltpu.CompilerParams(
            dimension_semantics=("arbitrary",),
            vmem_limit_bytes=int(vmem_limit),
        ),
        cost_estimate=cost,
    )(logits, targets_2d)
    return out[0, 0]


def _reference(logits, targets, num_classes, epsilon=0.1):
    log_probs = jax.nn.log_softmax(logits.astype(jnp.float32), axis=1)
    one_hot = jax.nn.one_hot(targets, num_classes, dtype=jnp.float32)
    smoothed = (1.0 - epsilon) * one_hot + epsilon / num_classes
    return jnp.mean(jnp.sum(-smoothed * log_probs, axis=1))


if __name__ == "__main__":
    num_classes = 128   # lane-dim multiple of 128 (non-degenerate vreg layout)
    batch = 20          # not a multiple of the tile -> exercises last-tile masking
    epsilon = 0.1

    key = jax.random.PRNGKey(0)
    k_logits, k_targets = jax.random.split(key)
    logits = jax.random.normal(k_logits, (batch, num_classes), dtype=jnp.float32)
    targets = jax.random.randint(k_targets, (batch,), 0, num_classes, dtype=jnp.int32)

    # Multi-tile path (3 batch tiles, last one partial).
    loss = cross_entropy_label_smooth(
        logits, targets, num_classes=num_classes, epsilon=epsilon, block_rows=8
    )
    loss = jax.block_until_ready(loss)
    ref = _reference(logits, targets, num_classes, epsilon)
    assert jnp.allclose(loss, ref, atol=1e-5, rtol=1e-5), (loss, ref)

    # bf16-input path with auto tile sizing (single full-extent tile here).
    logits_bf16 = logits.astype(jnp.bfloat16)
    loss_bf16 = cross_entropy_label_smooth(
        logits_bf16, targets, num_classes=num_classes, epsilon=epsilon
    )
    loss_bf16 = jax.block_until_ready(loss_bf16)
    ref_bf16 = _reference(logits_bf16.astype(jnp.float32), targets,
                          num_classes, epsilon)
    assert jnp.allclose(loss_bf16, ref_bf16, atol=1e-4, rtol=1e-4), (loss_bf16, ref_bf16)

    print("KERNEL_OK")
</pallas_src>

<mosaic_0001>
module attributes {stable_mosaic.version = 11 : i64} {
  func.func @_ce_label_smooth_kernel(%arg0: i32, %arg1: memref<8x128xf32, #tpu.memory_space<vmem>>, %arg2: memref<8x1xi32, #tpu.memory_space<vmem>>, %arg3: memref<1x1xf32, #tpu.memory_space<vmem>>, %arg4: memref<1x1xf32, #tpu.memory_space<vmem>>) attributes {dimension_semantics = [#tpu.dimension_semantics<arbitrary>], iteration_bounds = array<i64: 3>, scalar_prefetch = 0 : i64, scratch_operands = 1 : i64, tpu.core_type = #tpu.core_type<tc>, window_params = [{transform_indices = @transform_0, window_bounds = array<i64: 8, 128>}, {transform_indices = @transform_1, window_bounds = array<i64: 8, 1>}, {pipeline_mode = #tpu.pipeline_mode<synchronous>, transform_indices = @transform_2, window_bounds = array<i64: 1, 1>}]} {
    %c0_i32 = arith.constant 0 : i32
    %0 = arith.cmpi eq, %arg0, %c0_i32 : i32
    %1 = arith.extui %0 : i1 to i32
    %c0_i32_0 = arith.constant 0 : i32
    %2 = arith.cmpi ne, %1, %c0_i32_0 : i32
    scf.if %2 {
      %cst_18 = arith.constant 0.000000e+00 : f32
      %52 = vector.broadcast %cst_18 : f32 to vector<1x1xf32>
      %c0_19 = arith.constant 0 : index
      %c0_20 = arith.constant 0 : index
      %53 = vector.load %arg4[%c0_19, %c0_20] : memref<1x1xf32, #tpu.memory_space<vmem>>, vector<1x1xf32>
      tpu.vector_store %arg4[%c0_19, %c0_20], %52 {strides = array<i32>} : memref<1x1xf32, #tpu.memory_space<vmem>>, vector<1x1xf32>,
    } else {
    }
    %c0 = arith.constant 0 : index
    %c0_1 = arith.constant 0 : index
    %3 = vector.load %arg1[%c0, %c0_1] : memref<8x128xf32, #tpu.memory_space<vmem>>, vector<8x128xf32>
    %c0_2 = arith.constant 0 : index
    %c0_3 = arith.constant 0 : index
    %4 = vector.load %arg2[%c0_2, %c0_3] : memref<8x1xi32, #tpu.memory_space<vmem>>, vector<8x1xi32>
    %c8_i32 = arith.constant 8 : i32
    %5 = arith.muli %arg0, %c8_i32 : i32
    %6 = tpu.iota {dimensions = array<i32: 0>} : vector<8x1xi32>
    %7 = vector.broadcast %5 : i32 to vector<8x1xi32>
    %8 = arith.addi %7, %6 : vector<8x1xi32>
    %c20_i32 = arith.constant 20 : i32
    %9 = vector.broadcast %c20_i32 : i32 to vector<8x1xi32>
    %10 = arith.cmpi slt, %8, %9 : vector<8x1xi32>
    %cst = arith.constant 0.000000e+00 : f32
    %11 = vector.shape_cast %10 : vector<8x1xi1> to vector<8x1xi1>
    %12 = vector.broadcast %11 : vector<8x1xi1> to vector<8x128xi1>
    %13 = vector.broadcast %cst : f32 to vector<8x128xf32>
    %14 = arith.select %12, %3, %13 : vector<8x128xi1>, vector<8x128xf32>
    %cst_4 = arith.constant dense<0xFF800000> : vector<8xf32>
    %15 = vector.multi_reduction <maximumf>, %14, %cst_4 [1] : vector<8x128xf32> to vector<8xf32>
    %16 = vector.shape_cast %15 : vector<8xf32> to vector<8x1xf32>
    %17 = vector.broadcast %16 : vector<8x1xf32> to vector<8x128xf32>
    %18 = arith.subf %14, %17 : vector<8x128xf32>
    %19 = math.exp %18 : vector<8x128xf32>
    %cst_5 = arith.constant dense<0.000000e+00> : vector<8xf32>
    %20 = vector.multi_reduction <add>, %19, %cst_5 [1] : vector<8x128xf32> to vector<8xf32>
    %21 = vector.shape_cast %20 : vector<8xf32> to vector<8x1xf32>
    %22 = math.log %21 : vector<8x1xf32>
    %23 = arith.addf %16, %22 : vector<8x1xf32>
    %cst_6 = arith.constant dense<0.000000e+00> : vector<8xf32>
    %24 = vector.multi_reduction <add>, %14, %cst_6 [1] : vector<8x128xf32> to vector<8xf32>
    %25 = vector.shape_cast %24 : vector<8xf32> to vector<8x1xf32>
    %26 = tpu.iota {dimensions = array<i32: 1>} : vector<8x128xi32>
    %27 = vector.broadcast %4 : vector<8x1xi32> to vector<8x128xi32>
    %28 = arith.cmpi eq, %26, %27 : vector<8x128xi32>
    %cst_7 = arith.constant 0.000000e+00 : f32
    %29 = vector.broadcast %cst_7 : f32 to vector<8x128xf32>
    %30 = arith.select %28, %14, %29 : vector<8x128xi1>, vector<8x128xf32>
    %cst_8 = arith.constant dense<0.000000e+00> : vector<8xf32>
    %31 = vector.multi_reduction <add>, %30, %cst_8 [1] : vector<8x128xf32> to vector<8xf32>
    %32 = vector.shape_cast %31 : vector<8xf32> to vector<8x1xf32>
    %cst_9 = arith.constant 0.899999976 : f32
    %33 = vector.broadcast %cst_9 : f32 to vector<8x1xf32>
    %34 = arith.mulf %33, %32 : vector<8x1xf32>
    %35 = arith.subf %23, %34 : vector<8x1xf32>
    %cst_10 = arith.constant 7.812500e-04 : f32
    %36 = vector.broadcast %cst_10 : f32 to vector<8x1xf32>
    %37 = arith.mulf %36, %25 : vector<8x1xf32>
    %38 = arith.subf %35, %37 : vector<8x1xf32>
    %cst_11 = arith.constant 0.000000e+00 : f32
    %39 = vector.broadcast %cst_11 : f32 to vector<8x1xf32>
    %40 = arith.select %10, %38, %39 : vector<8x1xi1>, vector<8x1xf32>
    %c0_12 = arith.constant 0 : index
    %c0_13 = arith.constant 0 : index
    %41 = vector.load %arg4[%c0_12, %c0_13] : memref<1x1xf32, #tpu.memory_space<vmem>>, vector<1x1xf32>
    %42 = vector.shape_cast %40 : vector<8x1xf32> to vector<1x8x1xf32>
    %cst_14 = arith.constant dense<0.000000e+00> : vector<1xf32>
    %43 = vector.multi_reduction <add>, %42, %cst_14 [1, 2] : vector<1x8x1xf32> to vector<1xf32>
    %44 = vector.shape_cast %43 : vector<1xf32> to vector<1x1x1xf32>
    %45 = vector.extract %44[0, 0, 0] : f32 from vector<1x1x1xf32>
    %46 = vector.broadcast %45 : f32 to vector<1x1xf32>
    %47 = arith.addf %41, %46 : vector<1x1xf32>
    %c0_15 = arith.constant 0 : index
    %c0_16 = arith.constant 0 : index
    %48 = vector.load %arg4[%c0_15, %c0_16] : memref<1x1xf32, #tpu.memory_space<vmem>>, vector<1x1xf32>
    tpu.vector_store %arg4[%c0_15, %c0_16], %47 {strides = array<i32>} : memref<1x1xf32, #tpu.memory_space<vmem>>, vector<1x1xf32>,
    %c2_i32 = arith.constant 2 : i32
    %49 = arith.cmpi eq, %arg0, %c2_i32 : i32
    %50 = arith.extui %49 : i1 to i32
    %c0_i32_17 = arith.constant 0 : i32
    %51 = arith.cmpi ne, %50, %c0_i32_17 : i32
    scf.if %51 {
      %c0_18 = arith.constant 0 : index
      %c0_19 = arith.constant 0 : index
      %52 = vector.load %arg4[%c0_18, %c0_19] : memref<1x1xf32, #tpu.memory_space<vmem>>, vector<1x1xf32>
      %cst_20 = arith.constant 5.000000e-02 : f32
      %53 = vector.broadcast %cst_20 : f32 to vector<1x1xf32>
      %54 = arith.mulf %52, %53 : vector<1x1xf32>
      %c0_21 = arith.constant 0 : index
      %c0_22 = arith.constant 0 : index
      %55 = vector.load %arg3[%c0_21, %c0_22] : memref<1x1xf32, #tpu.memory_space<vmem>>, vector<1x1xf32>
      tpu.vector_store %arg3[%c0_21, %c0_22], %54 {strides = array<i32>} : memref<1x1xf32, #tpu.memory_space<vmem>>, vector<1x1xf32>,
    } else {
    }
    return
  }
  func.func @transform_0(%arg0: i32) -> (i32, i32) {
    %c0_i32 = arith.constant 0 : i32
    %c0_i32_0 = arith.constant 0 : i32
    return %arg0, %c0_i32 : i32, i32
  }
  func.func @transform_1(%arg0: i32) -> (i32, i32) {
    %c0_i32 = arith.constant 0 : i32
    %c0_i32_0 = arith.constant 0 : i32
    return %arg0, %c0_i32 : i32, i32
  }
  func.func @transform_2(%arg0: i32) -> (i32, i32) {
    %c0_i32 = arith.constant 0 : i32
    %c0_i32_0 = arith.constant 0 : i32
    %c0_i32_1 = arith.constant 0 : i32
    return %c0_i32, %c0_i32_0 : i32, i32
  }
}

</mosaic_0001>

<bundles_post_ra>
// kernel: tpu_custom_call.1
= control target key start
LH: loop header
LB: loop body
LE: loop exit
PB: predicated region body
PF: predicated region fallthrough
CT: control target
= control target key end

     0   :  { %7 = vsyncpa [#allocation4], 0  ;;  %s361_s9 = smov 0   ;;  %s410_s0 = inlined_call_operand.vmem [shape: f32[20,128], index: 0, kind: input, shape index: {}]   ;;  %s411_s1 = inlined_call_operand.vmem [shape: s32[20,1], index: 1, kind: input, shape index: {}]   ;;  %s412_s2 = inlined_call_operand.hbm [shape: f32[1,1], index: 2, kind: output, shape index: {}]  }
   0x1 LB: > { %s367_s10 = sadd.s32 4294967295, %s341_s9   ;;  %p271_p0 = scmp.ge.s32.totalorder %s341_s9, 1  ;;  %s341_s9 = sphi %s361_s9, %s13_s9  }
   0x2   : > { %p116_p1 = scmp.lt.s32.totalorder %s341_s9, 4 }
   0x4   : > { %p117_p2 = pnand %p271_p0, %p116_p1 }
   0x5   : > { %p136_p3 = scmp.lt.s32.totalorder (!%p117_p2), %s367_s10, 2  ;;  %p274_p4 = scmp.ne.s32.totalorder (!%p117_p2), %s367_s10, 0 }
   0x6   : > { %120 = sbr.rel (%p117_p2) target bundleno = 592 (0x250), region = 28 }
   0xd   : > { %s137_s11 = scalar_select %p136_p3, %s367_s10, 2 }
   0xe   : > { %147 = sbr.rel (%p274_p4) target bundleno = 21 (0x15), region = 32  ;;  %vm148_vm0 = vcmask (!%p274_p4), 0   ;;  %v343_v0 = vmov (!%p274_p4), 0.0  }
   0xf   : > { %s272_s12 = sshll.u32 %s137_s11, 3  ;;  %149 = vst.msk [vmem:[#allocation2] sm:$0x1] (!%p274_p4), %vm148_vm0, %v343_v0 }
  0x10   : > { %s139_s15 = scalar_lea.vmem %s410_s0, %s272_s12  ;;  %s143_s18 = scalar_lea.vmem %s411_s1, %s272_s12 }
  0x15 PF: > { %s275_s19 = sshll.u32 %s367_s10, 3  ;;  %v153_v1 = vlaneseq  ;;  %v344_v3 = vmov 0   ;;  %v150_v5 = vld [vmem:[%s139_s15] sm:$0xff]  ;;  %vm188_vm3 = vcmask 7168   ;;  %vm201_vm4 = vcmask 0   ;;  %p276_p5 = scmp.ne.s32.totalorder %s367_s10, 2 }
  0x16   : > { %v155_v2 = vstv %s275_s19  ;;  %300 = vset.pattern.permute.xlu0 %v344_v3  ;;  %v151_v8 = vld [vmem:[%s143_s18] sm:$0xff] }
  0x17   : > { %v154_v4 = vshrl.u32 %v153_v1, 7  ;;  %v174_v12 = vand.u32 127, %v153_v1  ;;  %v187_v35 = vld [vmem:[#allocation2] sm:$0x1] }
  0x19   : > { %v156_v6 = vadd.s32 %v155_v2, %v154_v4 }
  0x1b   : > { %vm157_vm1 = vcmp.lt.s32.totalorder %v156_v6, 20 }
  0x1c   : > { %v160_v7 = vsel %vm157_vm1, %v150_v5, 0.0 }
  0x1d   : > { %161 = vmax.xlane.f32.xlu0 %v160_v7 }
  0x33   : > { %176 = vperm.xlu0 %300, %v151_v8  }
  0xaa   : > { %v162_v9 = vpop.xlane.xlu0 %161 }
  0xab   : > { %v163_v10 = vsub.f32 %v160_v7, %v162_v9 }
  0xad   : > { %v164_v11 = vmul.f32 1.442695, %v163_v10 }
  0xaf   : > { %301 = vpow2.f32 %v164_v11 }
  0xb2   : > { %v177_v13 = vpop.permute.xlu0 %176 }
  0xb3   : > { %vm178_vm2 = vcmp.eq.s32.totalorder %v174_v12, %v177_v13 }
  0xb4   : > { %v179_v15 = vsel %vm178_vm2, %v160_v7, 0.0 }
  0xb9   : > { %v302_v14 = vpop.eup %301 }
  0xba   : > { %166 = vadd.xlane.f32.xlu1 %v302_v14 }
  0xbe   : > { %180 = vadd.xlane.f32.xlu1 %v179_v15 }
  0xc2   : > { %171 = vadd.xlane.f32.xlu1 %v160_v7 }
 0x147   : > { %v167_v16 = vpop.xlane.xlu1 %166 }
 0x148   : > { %303 = vlog2.f32 %v167_v16 }
 0x14b   : > { %v181_v17 = vpop.xlane.xlu1 %180 }
 0x14c   : > { %v182_v22 = vmul.f32 0.9, %v181_v17 }
 0x14f   : > { %v172_v19 = vpop.xlane.xlu1 %171 }
 0x150   : > { %v184_v23 = vmul.f32 0.00078125, %v172_v19 }
 0x152   : > { %v304_v18 = vpop.eup %303 }
 0x153   : > { %v169_v20 = vmul.f32 0.6931472, %v304_v18 }
 0x155   : > { %v170_v21 = vadd.f32 %v169_v20, %v162_v9 }
 0x157   : > { %v183_v24 = vsub.f32 %v170_v21, %v182_v22 }
 0x159   : > { %v185_v25 = vsub.f32 %v183_v24, %v184_v23 }
 0x15b   : > { %v186_v26 = vsel %vm157_vm1, %v185_v25, 0.0 }
 0x15c   : > { %v189_v27 = vsel %vm188_vm3, %v186_v26, 0.0 }
 0x15d   : > { %190 = vadd.xlane.f32.xlu1 %v189_v27 }
 0x1ea   : > { %v191_v28 = vpop.xlane.xlu1 %190 }
 0x1eb   : > { %v192_v29 = vrot.slane %v191_v28, 4 }
 0x1ed   : > { %v193_v30 = vadd.f32 %v192_v29, %v191_v28 }
 0x1ef   : > { %v194_v31 = vrot.slane %v193_v30, 2 }
 0x1f1   : > { %v195_v32 = vadd.f32 %v194_v31, %v193_v30 }
 0x1f3   : > { %v196_v33 = vrot.slane %v195_v32, 1 }
 0x1f5   : > { %v197_v34 = vadd.f32 %v196_v33, %v195_v32 }
 0x1f7   : > { %281 = vpush %v197_v34 }
 0x226   : > { %206 = sbr.rel (%p276_p5) target bundleno = 567 (0x237), region = 36 }
 0x228   : > { %s282_s20 = spop %281 }
 0x229   : > { %v199_v36 = vstv %s282_s20 }
 0x22a   : > { %v200_v37 = vadd.f32 %v199_v36, %v187_v35 }
 0x22c   : > { %202 = vst.msk [vmem:[#allocation2] sm:$0x1] %vm201_vm4, %v200_v37 }
 0x233   : > { %v207_v38 = vld [vmem:[#allocation2] sm:$0x1] }
 0x234   : > { %v208_v39 = vmul.f32 0.05, %v207_v38 }
 0x236   : > { %209 = vst.msk [vmem:[#allocation3] sm:$0x1] %vm201_vm4, %v208_v39 }
 0x237 PF: > { %p287_p6 = scmp.eq.s32.totalorder %s367_s10, 2  ;;  %s345_s21 = smov [#allocation3]  }
 0x238   : > { %s217_s22 = sshll.u32 %s345_s21, 4  ;;  %s218_s22 = int_to_ptr.vmem [resolvable:$true] %s217_s22 }
 0x239   : > { %s305_s23 = scalar_lea.vmem %s218_s22, 16  ;;  %s311_s24 = scalar_lea.vmem %s218_s22, 32 }
 0x23a   : > { %p306_p7 = scmp.ne.s32.totalorder %s218_s22, %s305_s23  ;;  %p312_p10 = scmp.lt.s32.totalorder %s218_s22, %s218_s22 }
 0x23b   : > { %p313_p11 = scmp.lt.s32.totalorder %s311_s24, %s305_s23 }
 0x23c   : > { %p307_p8 = pnand %p306_p7, %p287_p6 }
 0x23d   : > { %p314_p12 = por %p313_p11, %p312_p10 }
 0x23e   : > { %p308_p9 = pneg %p307_p8 }
 0x240   : > { %p315_p13 = pnand %p314_p12, %p308_p9 }
 0x242   : > { %318 = shalt.err (!%p315_p13)
}
 0x243   : > { %s319_s27 = scalar_lea.hbm %s412_s2, 16 }
 0x244   : > { %p320_p0 = scmp.ne.s32.totalorder %s412_s2, %s319_s27  ;;  %p325_p3 = scmp.lt.u32.totalorder %s319_s27, %s412_s2 }
 0x246   : > { %p321_p1 = pnand %p320_p0, %p287_p6 }
 0x248   : > { %p322_p2 = pneg %p321_p1 }
 0x24a   : > { %p327_p4 = pnand %p325_p3, %p322_p2 }
 0x24c   : > { %330 = shalt.err (!%p327_p4)
}
 0x24d   : > { %284 = dma.vmem_to_hbm [thread:$0]  (%p287_p6), %s218_s22, 16, %s412_s2, [#allocation4]  }
 0x24e   : > { %336 = dma.done.wait (%p287_p6), [#allocation4], 16  }
 0x24f   : > { %338 = vsyncadd (%p287_p6), [#allocation4], 4294967280 }
 0x250 PF: > { %s13_s9 = sadd.s32 1, %s341_s9  }
 0x251   : > { %p10_p5 = scmp.ge.s32.totalorder %s13_s9, 5  }
 0x253   :  { %12 = sbr.rel (!%p10_p5) target bundleno = 1 (0x1), region = 66 }
 0x25a   :  { %230 = vsyncpa [#allocation4], 1 }
 0x25b   :  { %232 = vsyncpa [#allocation4 + $0x1], 1 }

</bundles_post_ra>
